<compile_context>
chip_gen: v7x
topology: tpu7x:2x2x1
jax: 0.10.0
libtpu: 0.0.40
codegen_flags: <defaults>
</compile_context>

<pallas_src>
import math

import jax
import jax.numpy as jnp
from jax.experimental import pallas as pl
from jax.experimental.pallas import tpu as pltpu

TREAT_IDX = 0
CONTROL_IDX = 1

LANE = 128      # pad R / H feature axes to multiples of the lane width
SUBLANE = 8     # batch tile granularity
MAX_TB = 1024   # batch tile cap (per-block footprint stays well under VMEM)


def _round_up(v, m):
    return ((v + m - 1) // m) * m


def _elu(v):
    # PyTorch nn.ELU() default alpha=1.0: x if x > 0 else exp(x) - 1.
    # exp(min(v,0)) - 1 kept instead of expm1 (Mosaic lowering of expm1 not
    # guaranteed); the cancellation error near 0^- is < ~6e-8, negligible vs bf16.
    return jnp.where(v > 0, v, jnp.exp(jnp.minimum(v, 0.0)) - 1.0)


def cfr_kernel(x_ref, t_ref,
               rw1_ref, rw23_ref, rb_ref,   # representation MLP (stacked)
               hw1_ref, hb1_ref,            # fused treat|control hypothesis layer-1
               hw23_ref, hbow_ref,          # stacked hyp layers 2,3 + output row (ow)
               ob_ref,                      # output bias (1, 1)
               r_out_ref, yf_out_ref):
    def linear_elu(act, w, b):
        # bf16 MXU operands, f32 accumulation, f32 bias + ELU on the VPU/EUP.
        y = jnp.dot(act.astype(jnp.bfloat16), w,
                    preferred_element_type=jnp.float32) + b
        return _elu(y)

    # --- representation network ---
    r = linear_elu(x_ref[...], rw1_ref[...], rb_ref[0])
    r = linear_elu(r, rw23_ref[0], rb_ref[1])
    r = linear_elu(r, rw23_ref[1], rb_ref[2])
    r_out_ref[...] = r.astype(r_out_ref.dtype)

    # --- both hypothesis branches; layer 1 fused into one N = 2*Hp matmul ---
    hp = hw23_ref.shape[-1]
    h1 = linear_elu(r, hw1_ref[...], hb1_ref[...])            # (TB, 2*Hp)
    ht = linear_elu(linear_elu(h1[:, :hp], hw23_ref[0], hbow_ref[0]),
                    hw23_ref[1], hbow_ref[1])
    hc = linear_elu(linear_elu(h1[:, hp:], hw23_ref[2], hbow_ref[2]),
                    hw23_ref[3], hbow_ref[3])

    # per-row branch select (matches the PyTorch gather/scatter for t in {0,1};
    # other t values -- including padded rows -- leave the row zero).
    t = t_ref[...]                                            # (TB, 1) int32
    h = (ht * (t == TREAT_IDX).astype(jnp.float32)
         + hc * (t == CONTROL_IDX).astype(jnp.float32))

    # --- output head: N=1 matmul -> VPU multiply + lane reduction ---
    yf = jnp.sum(h * hbow_ref[4], axis=-1, keepdims=True) + ob_ref[...]
    yf_out_ref[...] = yf.astype(yf_out_ref.dtype)


def init_cfr_params(key, feature_dim, representation_dim=200, hypothesis_dim=200):
    """Deterministic synthetic parameters. Linear weights stored as (in, out)."""
    dims = {
        "rw1": (feature_dim, representation_dim),
        "rw2": (representation_dim, representation_dim),
        "rw3": (representation_dim, representation_dim),
        "tw1": (representation_dim, hypothesis_dim),
        "tw2": (hypothesis_dim, hypothesis_dim),
        "tw3": (hypothesis_dim, hypothesis_dim),
        "cw1": (representation_dim, hypothesis_dim),
        "cw2": (hypothesis_dim, hypothesis_dim),
        "cw3": (hypothesis_dim, hypothesis_dim),
        "ow": (hypothesis_dim, 1),
    }
    params = {}
    keys = jax.random.split(key, len(dims))
    for (name, shape), k in zip(dims.items(), keys):
        scale = 1.0 / jnp.sqrt(jnp.float32(shape[0]))
        params[name] = jax.random.normal(k, shape, jnp.float32) * scale
        params[name.replace("w", "b")] = jnp.full((1, shape[1]), 0.01, jnp.float32)
    return params


@jax.jit
def cfr_forward(x, t, params):
    B, F = x.shape
    R = params["rw3"].shape[1]
    H = params["tw3"].shape[1]
    Rp = _round_up(R, LANE)
    Hp = _round_up(H, LANE)

    # --- zero-pad to lane-dense widths; weights -> bf16, biases stay f32 ---
    def pw(w, rows, cols):
        return jnp.pad(w, ((0, rows - w.shape[0]),
                           (0, cols - w.shape[1]))).astype(jnp.bfloat16)

    def pb(b, cols):
        return jnp.pad(b, ((0, 0), (0, cols - b.shape[1])))

    # Stack same-shaped params into few operands (22 -> 10 total pallas operands).
    rw1 = pw(params["rw1"], F, Rp)
    rw23 = jnp.stack([pw(params["rw2"], Rp, Rp), pw(params["rw3"], Rp, Rp)])
    rb = jnp.stack([pb(params["rb1"], Rp), pb(params["rb2"], Rp),
                    pb(params["rb3"], Rp)])
    hw1 = jnp.concatenate([pw(params["tw1"], Rp, Hp),
                           pw(params["cw1"], Rp, Hp)], axis=1)   # (Rp, 2*Hp)
    hb1 = jnp.concatenate([pb(params["tb1"], Hp),
                           pb(params["cb1"], Hp)], axis=1)       # (1, 2*Hp)
    hw23 = jnp.stack([pw(params["tw2"], Hp, Hp), pw(params["tw3"], Hp, Hp),
                      pw(params["cw2"], Hp, Hp), pw(params["cw3"], Hp, Hp)])
    hbow = jnp.stack([pb(params["tb2"], Hp), pb(params["tb3"], Hp),
                      pb(params["cb2"], Hp), pb(params["cb3"], Hp),
                      pb(params["ow"].T, Hp)])                   # (5, 1, Hp) f32
    ob = params["ob"]                                            # (1, 1) f32
    weight_ops = [rw1, rw23, rb, hw1, hb1, hw23, hbow, ob]

    # --- batch tiling: balanced tiles, >=2 blocks unless the batch is tiny ---
    Bp8 = _round_up(B, SUBLANE)
    if Bp8 <= 2 * SUBLANE:
        nb = 1                                   # tiny batch: single block
    else:
        nb = max(2, -(-Bp8 // MAX_TB))           # >=2 blocks -> both v7x TCs used
    TB = _round_up(-(-Bp8 // nb), SUBLANE)       # balanced tile, multiple of 8
    Bp = _round_up(Bp8, TB)
    nb = Bp // TB

    xp = jnp.pad(x.astype(jnp.bfloat16), ((0, Bp - B), (0, 0)))
    tp = jnp.pad(t.reshape(B, 1).astype(jnp.int32), ((0, Bp - B), (0, 0)),
                 constant_values=-1)             # padded rows select neither branch

    def row_spec(cols):
        return pl.BlockSpec((TB, cols), lambda i: (i, 0))

    def const_spec(a):
        zeros = (0,) * a.ndim
        return pl.BlockSpec(a.shape, lambda i, z=zeros: z)   # VMEM-resident

    # --- tight VMEM budget: double-buffered block footprint + headroom ---
    weight_bytes = sum(int(math.prod(a.shape)) * a.dtype.itemsize for a in weight_ops)
    block_bytes = TB * (2 * F + 4) + TB * (Rp + 1) * 4 + weight_bytes
    vmem_limit = int(min(56 * 2**20, max(16 * 2**20, 2 * block_bytes + 8 * 2**20)))

    flops = 2 * Bp * (F * Rp + 2 * Rp * Rp + Rp * 2 * Hp + 4 * Hp * Hp + Hp)
    transcendentals = Bp * (3 * Rp + 6 * Hp)
    bytes_accessed = (weight_bytes
                      + Bp * (2 * F + 4)          # x (bf16) + t (i32) in
                      + Bp * (Rp + 1) * 4)        # r, yf out (f32)

    r_p, yf_p = pl.pallas_call(
        cfr_kernel,
        out_shape=(jax.ShapeDtypeStruct((Bp, Rp), jnp.float32),
                   jax.ShapeDtypeStruct((Bp, 1), jnp.float32)),
        grid_spec=pltpu.PrefetchScalarGridSpec(
            num_scalar_prefetch=0,
            grid=(nb,),
            in_specs=[row_spec(F), row_spec(1)] + [const_spec(a) for a in weight_ops],
            out_specs=(row_spec(Rp), row_spec(1)),
        ),
        compiler_params=pltpu.CompilerParams(
            dimension_semantics=("parallel",),
            vmem_limit_bytes=vmem_limit),
        cost_estimate=pl.CostEstimate(flops=int(flops),
                                      transcendentals=int(transcendentals),
                                      bytes_accessed=int(bytes_accessed)),
    )(xp, tp, *weight_ops)

    return r_p[:B, :R], yf_p[:B]


def cfr_forward_ref(x, t, params, matmul_dtype=jnp.bfloat16):
    """Pure-JAX reference. matmul_dtype=bfloat16 matches the kernel's precision;
    matmul_dtype=float32 gives the full-precision (PyTorch-like) semantics."""
    def layer(h, w, b):
        y = jnp.dot(h.astype(matmul_dtype), w.astype(matmul_dtype),
                    preferred_element_type=jnp.float32) + b
        return _elu(y)

    r = x
    for i in (1, 2, 3):
        r = layer(r, params[f"rw{i}"], params[f"rb{i}"])
    ht, hc = r, r
    for i in (1, 2, 3):
        ht = layer(ht, params[f"tw{i}"], params[f"tb{i}"])
        hc = layer(hc, params[f"cw{i}"], params[f"cb{i}"])
    tm = (t.reshape(-1, 1) == TREAT_IDX).astype(jnp.float32)
    cm = (t.reshape(-1, 1) == CONTROL_IDX).astype(jnp.float32)
    h = ht * tm + hc * cm
    yf = h @ params["ow"] + params["ob"]
    return r, yf


if __name__ == "__main__":
    # Small shapes consistent with the module: B=8, feature_dim=16,
    # representation_dim=32, hypothesis_dim=32.
    B, F, R, H = 8, 16, 32, 32

    key = jax.random.PRNGKey(0)
    kx, kt, kp = jax.random.split(key, 3)
    x = jax.random.normal(kx, (B, F), jnp.float32)
    t = jax.random.bernoulli(kt, 0.5, (B,)).astype(jnp.int32)  # labels in {0,1}
    params = init_cfr_params(kp, F, representation_dim=R, hypothesis_dim=H)

    r, yf = cfr_forward(x, t, params)
    jax.block_until_ready((r, yf))
    assert r.shape == (B, R) and yf.shape == (B, 1)

    # Tight check vs the matched-precision (bf16 MXU) reference.
    r_ref, yf_ref = cfr_forward_ref(x, t, params, matmul_dtype=jnp.bfloat16)
    assert jnp.allclose(r, r_ref, atol=2e-3, rtol=2e-3), "representation mismatch (bf16 ref)"
    assert jnp.allclose(yf, yf_ref, atol=2e-3, rtol=2e-3), "yf mismatch (bf16 ref)"

    # Coarse sanity check vs the full-f32 reference (module-precision semantics);
    # the gap here is the expected bf16 MXU cast error.
    r32, yf32 = cfr_forward_ref(x, t, params, matmul_dtype=jnp.float32)
    assert jnp.allclose(r, r32, atol=1e-1, rtol=1e-1), "representation mismatch (f32 ref)"
    assert jnp.allclose(yf, yf32, atol=1e-1, rtol=1e-1), "yf mismatch (f32 ref)"

    print("KERNEL_OK")
</pallas_src>

<mosaic_0001>
module attributes {stable_mosaic.version = 11 : i64} {
  func.func @cfr_kernel(%arg0: i32, %arg1: memref<8x16xbf16, #tpu.memory_space<vmem>>, %arg2: memref<8x1xi32, #tpu.memory_space<vmem>>, %arg3: memref<16x128xbf16, #tpu.memory_space<vmem>>, %arg4: memref<2x128x128xbf16, #tpu.memory_space<vmem>>, %arg5: memref<3x1x128xf32, #tpu.memory_space<vmem>>, %arg6: memref<128x256xbf16, #tpu.memory_space<vmem>>, %arg7: memref<1x256xf32, #tpu.memory_space<vmem>>, %arg8: memref<4x128x128xbf16, #tpu.memory_space<vmem>>, %arg9: memref<5x1x128xf32, #tpu.memory_space<vmem>>, %arg10: memref<1x1xf32, #tpu.memory_space<vmem>>, %arg11: memref<8x128xf32, #tpu.memory_space<vmem>>, %arg12: memref<8x1xf32, #tpu.memory_space<vmem>>) attributes {dimension_semantics = [#tpu.dimension_semantics<parallel>], iteration_bounds = array<i64: 1>, scalar_prefetch = 0 : i64, scratch_operands = 0 : i64, tpu.core_type = #tpu.core_type<tc>, window_params = [{transform_indices = @transform_0, window_bounds = array<i64: 8, 16>}, {transform_indices = @transform_1, window_bounds = array<i64: 8, 1>}, {pipeline_mode = #tpu.pipeline_mode<synchronous>, transform_indices = @transform_2, window_bounds = array<i64: 16, 128>}, {pipeline_mode = #tpu.pipeline_mode<synchronous>, transform_indices = @transform_3, window_bounds = array<i64: 2, 128, 128>}, {pipeline_mode = #tpu.pipeline_mode<synchronous>, transform_indices = @transform_4, window_bounds = array<i64: 3, 1, 128>}, {pipeline_mode = #tpu.pipeline_mode<synchronous>, transform_indices = @transform_5, window_bounds = array<i64: 128, 256>}, {pipeline_mode = #tpu.pipeline_mode<synchronous>, transform_indices = @transform_6, window_bounds = array<i64: 1, 256>}, {pipeline_mode = #tpu.pipeline_mode<synchronous>, transform_indices = @transform_7, window_bounds = array<i64: 4, 128, 128>}, {pipeline_mode = #tpu.pipeline_mode<synchronous>, transform_indices = @transform_8, window_bounds = array<i64: 5, 1, 128>}, {pipeline_mode = #tpu.pipeline_mode<synchronous>, transform_indices = @transform_9, window_bounds = array<i64: 1, 1>}, {transform_indices = @transform_10, window_bounds = array<i64: 8, 128>}, {transform_indices = @transform_11, window_bounds = array<i64: 8, 1>}]} {
    %c0 = arith.constant 0 : index
    %c0_0 = arith.constant 0 : index
    %0 = vector.load %arg1[%c0, %c0_0] : memref<8x16xbf16, #tpu.memory_space<vmem>>, vector<8x16xbf16>
    %c0_1 = arith.constant 0 : index
    %c0_2 = arith.constant 0 : index
    %1 = vector.load %arg3[%c0_1, %c0_2] : memref<16x128xbf16, #tpu.memory_space<vmem>>, vector<16x128xbf16>
    %c0_3 = arith.constant 0 : index
    %c0_4 = arith.constant 0 : index
    %c0_5 = arith.constant 0 : index
    %2 = vector.load %arg5[%c0_3, %c0_4, %c0_5] : memref<3x1x128xf32, #tpu.memory_space<vmem>>, vector<1x1x128xf32>
    %3 = vector.shape_cast %2 : vector<1x1x128xf32> to vector<1x128xf32>
    %cst = arith.constant dense<0.000000e+00> : vector<8x128xf32>
    %4 = tpu.matmul %0, %1, %cst {dimension_numbers = #tpu.dot_dimension_numbers<[1], [0], [0], [1], [0, 0, 1, 1], [], []>} : vector<8x16xbf16>, vector<16x128xbf16>, vector<8x128xf32> -> vector<8x128xf32>
    %5 = vector.broadcast %3 : vector<1x128xf32> to vector<8x128xf32>
    %6 = arith.addf %4, %5 : vector<8x128xf32>
    %cst_6 = arith.constant 0.000000e+00 : f32
    %7 = vector.broadcast %cst_6 : f32 to vector<8x128xf32>
    %8 = arith.cmpf ogt, %6, %7 : vector<8x128xf32>
    %cst_7 = arith.constant 0.000000e+00 : f32
    %9 = vector.broadcast %cst_7 : f32 to vector<8x128xf32>
    %10 = arith.minimumf %6, %9 : vector<8x128xf32>
    %11 = math.exp %10 : vector<8x128xf32>
    %cst_8 = arith.constant 1.000000e+00 : f32
    %12 = vector.broadcast %cst_8 : f32 to vector<8x128xf32>
    %13 = arith.subf %11, %12 : vector<8x128xf32>
    %14 = arith.select %8, %6, %13 : vector<8x128xi1>, vector<8x128xf32>
    %c0_9 = arith.constant 0 : index
    %c0_10 = arith.constant 0 : index
    %c0_11 = arith.constant 0 : index
    %15 = vector.load %arg4[%c0_9, %c0_10, %c0_11] : memref<2x128x128xbf16, #tpu.memory_space<vmem>>, vector<1x128x128xbf16>
    %16 = vector.shape_cast %15 : vector<1x128x128xbf16> to vector<128x128xbf16>
    %c1 = arith.constant 1 : index
    %c0_12 = arith.constant 0 : index
    %c0_13 = arith.constant 0 : index
    %17 = vector.load %arg5[%c1, %c0_12, %c0_13] : memref<3x1x128xf32, #tpu.memory_space<vmem>>, vector<1x1x128xf32>
    %18 = vector.shape_cast %17 : vector<1x1x128xf32> to vector<1x128xf32>
    %19 = arith.truncf %14 : vector<8x128xf32> to vector<8x128xbf16>
    %cst_14 = arith.constant dense<0.000000e+00> : vector<8x128xf32>
    %20 = tpu.matmul %19, %16, %cst_14 {dimension_numbers = #tpu.dot_dimension_numbers<[1], [0], [0], [1], [0, 0, 1, 1], [], []>} : vector<8x128xbf16>, vector<128x128xbf16>, vector<8x128xf32> -> vector<8x128xf32>
    %21 = vector.broadcast %18 : vector<1x128xf32> to vector<8x128xf32>
    %22 = arith.addf %20, %21 : vector<8x128xf32>
    %cst_15 = arith.constant 0.000000e+00 : f32
    %23 = vector.broadcast %cst_15 : f32 to vector<8x128xf32>
    %24 = arith.cmpf ogt, %22, %23 : vector<8x128xf32>
    %cst_16 = arith.constant 0.000000e+00 : f32
    %25 = vector.broadcast %cst_16 : f32 to vector<8x128xf32>
    %26 = arith.minimumf %22, %25 : vector<8x128xf32>
    %27 = math.exp %26 : vector<8x128xf32>
    %cst_17 = arith.constant 1.000000e+00 : f32
    %28 = vector.broadcast %cst_17 : f32 to vector<8x128xf32>
    %29 = arith.subf %27, %28 : vector<8x128xf32>
    %30 = arith.select %24, %22, %29 : vector<8x128xi1>, vector<8x128xf32>
    %c1_18 = arith.constant 1 : index
    %c0_19 = arith.constant 0 : index
    %c0_20 = arith.constant 0 : index
    %31 = vector.load %arg4[%c1_18, %c0_19, %c0_20] : memref<2x128x128xbf16, #tpu.memory_space<vmem>>, vector<1x128x128xbf16>
    %32 = vector.shape_cast %31 : vector<1x128x128xbf16> to vector<128x128xbf16>
    %c2 = arith.constant 2 : index
    %c0_21 = arith.constant 0 : index
    %c0_22 = arith.constant 0 : index
    %33 = vector.load %arg5[%c2, %c0_21, %c0_22] : memref<3x1x128xf32, #tpu.memory_space<vmem>>, vector<1x1x128xf32>
    %34 = vector.shape_cast %33 : vector<1x1x128xf32> to vector<1x128xf32>
    %35 = arith.truncf %30 : vector<8x128xf32> to vector<8x128xbf16>
    %cst_23 = arith.constant dense<0.000000e+00> : vector<8x128xf32>
    %36 = tpu.matmul %35, %32, %cst_23 {dimension_numbers = #tpu.dot_dimension_numbers<[1], [0], [0], [1], [0, 0, 1, 1], [], []>} : vector<8x128xbf16>, vector<128x128xbf16>, vector<8x128xf32> -> vector<8x128xf32>
    %37 = vector.broadcast %34 : vector<1x128xf32> to vector<8x128xf32>
    %38 = arith.addf %36, %37 : vector<8x128xf32>
    %cst_24 = arith.constant 0.000000e+00 : f32
    %39 = vector.broadcast %cst_24 : f32 to vector<8x128xf32>
    %40 = arith.cmpf ogt, %38, %39 : vector<8x128xf32>
    %cst_25 = arith.constant 0.000000e+00 : f32
    %41 = vector.broadcast %cst_25 : f32 to vector<8x128xf32>
    %42 = arith.minimumf %38, %41 : vector<8x128xf32>
    %43 = math.exp %42 : vector<8x128xf32>
    %cst_26 = arith.constant 1.000000e+00 : f32
    %44 = vector.broadcast %cst_26 : f32 to vector<8x128xf32>
    %45 = arith.subf %43, %44 : vector<8x128xf32>
    %46 = arith.select %40, %38, %45 : vector<8x128xi1>, vector<8x128xf32>
    %c0_27 = arith.constant 0 : index
    %c0_28 = arith.constant 0 : index
    %47 = vector.load %arg11[%c0_27, %c0_28] : memref<8x128xf32, #tpu.memory_space<vmem>>, vector<8x128xf32>
    tpu.vector_store %arg11[%c0_27, %c0_28], %46 {strides = array<i32>} : memref<8x128xf32, #tpu.memory_space<vmem>>, vector<8x128xf32>,
    %c0_29 = arith.constant 0 : index
    %c0_30 = arith.constant 0 : index
    %48 = vector.load %arg6[%c0_29, %c0_30] : memref<128x256xbf16, #tpu.memory_space<vmem>>, vector<128x256xbf16>
    %c0_31 = arith.constant 0 : index
    %c0_32 = arith.constant 0 : index
    %49 = vector.load %arg7[%c0_31, %c0_32] : memref<1x256xf32, #tpu.memory_space<vmem>>, vector<1x256xf32>
    %50 = arith.truncf %46 : vector<8x128xf32> to vector<8x128xbf16>
    %cst_33 = arith.constant dense<0.000000e+00> : vector<8x256xf32>
    %51 = tpu.matmul %50, %48, %cst_33 {dimension_numbers = #tpu.dot_dimension_numbers<[1], [0], [0], [1], [0, 0, 1, 1], [], []>} : vector<8x128xbf16>, vector<128x256xbf16>, vector<8x256xf32> -> vector<8x256xf32>
    %52 = vector.broadcast %49 : vector<1x256xf32> to vector<8x256xf32>
    %53 = arith.addf %51, %52 : vector<8x256xf32>
    %cst_34 = arith.constant 0.000000e+00 : f32
    %54 = vector.broadcast %cst_34 : f32 to vector<8x256xf32>
    %55 = arith.cmpf ogt, %53, %54 : vector<8x256xf32>
    %cst_35 = arith.constant 0.000000e+00 : f32
    %56 = vector.broadcast %cst_35 : f32 to vector<8x256xf32>
    %57 = arith.minimumf %53, %56 : vector<8x256xf32>
    %58 = math.exp %57 : vector<8x256xf32>
    %cst_36 = arith.constant 1.000000e+00 : f32
    %59 = vector.broadcast %cst_36 : f32 to vector<8x256xf32>
    %60 = arith.subf %58, %59 : vector<8x256xf32>
    %61 = arith.select %55, %53, %60 : vector<8x256xi1>, vector<8x256xf32>
    %62 = vector.extract_strided_slice %61 {offsets = [0, 0], sizes = [8, 128], strides = [1, 1]} : vector<8x256xf32> to vector<8x128xf32>
    %c0_37 = arith.constant 0 : index
    %c0_38 = arith.constant 0 : index
    %c0_39 = arith.constant 0 : index
    %63 = vector.load %arg8[%c0_37, %c0_38, %c0_39] : memref<4x128x128xbf16, #tpu.memory_space<vmem>>, vector<1x128x128xbf16>
    %64 = vector.shape_cast %63 : vector<1x128x128xbf16> to vector<128x128xbf16>
    %c0_40 = arith.constant 0 : index
    %c0_41 = arith.constant 0 : index
    %c0_42 = arith.constant 0 : index
    %65 = vector.load %arg9[%c0_40, %c0_41, %c0_42] : memref<5x1x128xf32, #tpu.memory_space<vmem>>, vector<1x1x128xf32>
    %66 = vector.shape_cast %65 : vector<1x1x128xf32> to vector<1x128xf32>
    %67 = arith.truncf %62 : vector<8x128xf32> to vector<8x128xbf16>
    %cst_43 = arith.constant dense<0.000000e+00> : vector<8x128xf32>
    %68 = tpu.matmul %67, %64, %cst_43 {dimension_numbers = #tpu.dot_dimension_numbers<[1], [0], [0], [1], [0, 0, 1, 1], [], []>} : vector<8x128xbf16>, vector<128x128xbf16>, vector<8x128xf32> -> vector<8x128xf32>
    %69 = vector.broadcast %66 : vector<1x128xf32> to vector<8x128xf32>
    %70 = arith.addf %68, %69 : vector<8x128xf32>
    %cst_44 = arith.constant 0.000000e+00 : f32
    %71 = vector.broadcast %cst_44 : f32 to vector<8x128xf32>
    %72 = arith.cmpf ogt, %70, %71 : vector<8x128xf32>
    %cst_45 = arith.constant 0.000000e+00 : f32
    %73 = vector.broadcast %cst_45 : f32 to vector<8x128xf32>
    %74 = arith.minimumf %70, %73 : vector<8x128xf32>
    %75 = math.exp %74 : vector<8x128xf32>
    %cst_46 = arith.constant 1.000000e+00 : f32
    %76 = vector.broadcast %cst_46 : f32 to vector<8x128xf32>
    %77 = arith.subf %75, %76 : vector<8x128xf32>
    %78 = arith.select %72, %70, %77 : vector<8x128xi1>, vector<8x128xf32>
    %c1_47 = arith.constant 1 : index
    %c0_48 = arith.constant 0 : index
    %c0_49 = arith.constant 0 : index
    %79 = vector.load %arg8[%c1_47, %c0_48, %c0_49] : memref<4x128x128xbf16, #tpu.memory_space<vmem>>, vector<1x128x128xbf16>
    %80 = vector.shape_cast %79 : vector<1x128x128xbf16> to vector<128x128xbf16>
    %c1_50 = arith.constant 1 : index
    %c0_51 = arith.constant 0 : index
    %c0_52 = arith.constant 0 : index
    %81 = vector.load %arg9[%c1_50, %c0_51, %c0_52] : memref<5x1x128xf32, #tpu.memory_space<vmem>>, vector<1x1x128xf32>
    %82 = vector.shape_cast %81 : vector<1x1x128xf32> to vector<1x128xf32>
    %83 = arith.truncf %78 : vector<8x128xf32> to vector<8x128xbf16>
    %cst_53 = arith.constant dense<0.000000e+00> : vector<8x128xf32>
    %84 = tpu.matmul %83, %80, %cst_53 {dimension_numbers = #tpu.dot_dimension_numbers<[1], [0], [0], [1], [0, 0, 1, 1], [], []>} : vector<8x128xbf16>, vector<128x128xbf16>, vector<8x128xf32> -> vector<8x128xf32>
    %85 = vector.broadcast %82 : vector<1x128xf32> to vector<8x128xf32>
    %86 = arith.addf %84, %85 : vector<8x128xf32>
    %cst_54 = arith.constant 0.000000e+00 : f32
    %87 = vector.broadcast %cst_54 : f32 to vector<8x128xf32>
    %88 = arith.cmpf ogt, %86, %87 : vector<8x128xf32>
    %cst_55 = arith.constant 0.000000e+00 : f32
    %89 = vector.broadcast %cst_55 : f32 to vector<8x128xf32>
    %90 = arith.minimumf %86, %89 : vector<8x128xf32>
    %91 = math.exp %90 : vector<8x128xf32>
    %cst_56 = arith.constant 1.000000e+00 : f32
    %92 = vector.broadcast %cst_56 : f32 to vector<8x128xf32>
    %93 = arith.subf %91, %92 : vector<8x128xf32>
    %94 = arith.select %88, %86, %93 : vector<8x128xi1>, vector<8x128xf32>
    %95 = vector.extract_strided_slice %61 {offsets = [0, 128], sizes = [8, 128], strides = [1, 1]} : vector<8x256xf32> to vector<8x128xf32>
    %c2_57 = arith.constant 2 : index
    %c0_58 = arith.constant 0 : index
    %c0_59 = arith.constant 0 : index
    %96 = vector.load %arg8[%c2_57, %c0_58, %c0_59] : memref<4x128x128xbf16, #tpu.memory_space<vmem>>, vector<1x128x128xbf16>
    %97 = vector.shape_cast %96 : vector<1x128x128xbf16> to vector<128x128xbf16>
    %c2_60 = arith.constant 2 : index
    %c0_61 = arith.constant 0 : index
    %c0_62 = arith.constant 0 : index
    %98 = vector.load %arg9[%c2_60, %c0_61, %c0_62] : memref<5x1x128xf32, #tpu.memory_space<vmem>>, vector<1x1x128xf32>
    %99 = vector.shape_cast %98 : vector<1x1x128xf32> to vector<1x128xf32>
    %100 = arith.truncf %95 : vector<8x128xf32> to vector<8x128xbf16>
    %cst_63 = arith.constant dense<0.000000e+00> : vector<8x128xf32>
    %101 = tpu.matmul %100, %97, %cst_63 {dimension_numbers = #tpu.dot_dimension_numbers<[1], [0], [0], [1], [0, 0, 1, 1], [], []>} : vector<8x128xbf16>, vector<128x128xbf16>, vector<8x128xf32> -> vector<8x128xf32>
    %102 = vector.broadcast %99 : vector<1x128xf32> to vector<8x128xf32>
    %103 = arith.addf %101, %102 : vector<8x128xf32>
    %cst_64 = arith.constant 0.000000e+00 : f32
    %104 = vector.broadcast %cst_64 : f32 to vector<8x128xf32>
    %105 = arith.cmpf ogt, %103, %104 : vector<8x128xf32>
    %cst_65 = arith.constant 0.000000e+00 : f32
    %106 = vector.broadcast %cst_65 : f32 to vector<8x128xf32>
    %107 = arith.minimumf %103, %106 : vector<8x128xf32>
    %108 = math.exp %107 : vector<8x128xf32>
    %cst_66 = arith.constant 1.000000e+00 : f32
    %109 = vector.broadcast %cst_66 : f32 to vector<8x128xf32>
    %110 = arith.subf %108, %109 : vector<8x128xf32>
    %111 = arith.select %105, %103, %110 : vector<8x128xi1>, vector<8x128xf32>
    %c3 = arith.constant 3 : index
    %c0_67 = arith.constant 0 : index
    %c0_68 = arith.constant 0 : index
    %112 = vector.load %arg8[%c3, %c0_67, %c0_68] : memref<4x128x128xbf16, #tpu.memory_space<vmem>>, vector<1x128x128xbf16>
    %113 = vector.shape_cast %112 : vector<1x128x128xbf16> to vector<128x128xbf16>
    %c3_69 = arith.constant 3 : index
    %c0_70 = arith.constant 0 : index
    %c0_71 = arith.constant 0 : index
    %114 = vector.load %arg9[%c3_69, %c0_70, %c0_71] : memref<5x1x128xf32, #tpu.memory_space<vmem>>, vector<1x1x128xf32>
    %115 = vector.shape_cast %114 : vector<1x1x128xf32> to vector<1x128xf32>
    %116 = arith.truncf %111 : vector<8x128xf32> to vector<8x128xbf16>
    %cst_72 = arith.constant dense<0.000000e+00> : vector<8x128xf32>
    %117 = tpu.matmul %116, %113, %cst_72 {dimension_numbers = #tpu.dot_dimension_numbers<[1], [0], [0], [1], [0, 0, 1, 1], [], []>} : vector<8x128xbf16>, vector<128x128xbf16>, vector<8x128xf32> -> vector<8x128xf32>
    %118 = vector.broadcast %115 : vector<1x128xf32> to vector<8x128xf32>
    %119 = arith.addf %117, %118 : vector<8x128xf32>
    %cst_73 = arith.constant 0.000000e+00 : f32
    %120 = vector.broadcast %cst_73 : f32 to vector<8x128xf32>
    %121 = arith.cmpf ogt, %119, %120 : vector<8x128xf32>
    %cst_74 = arith.constant 0.000000e+00 : f32
    %122 = vector.broadcast %cst_74 : f32 to vector<8x128xf32>
    %123 = arith.minimumf %119, %122 : vector<8x128xf32>
    %124 = math.exp %123 : vector<8x128xf32>
    %cst_75 = arith.constant 1.000000e+00 : f32
    %125 = vector.broadcast %cst_75 : f32 to vector<8x128xf32>
    %126 = arith.subf %124, %125 : vector<8x128xf32>
    %127 = arith.select %121, %119, %126 : vector<8x128xi1>, vector<8x128xf32>
    %c0_76 = arith.constant 0 : index
    %c0_77 = arith.constant 0 : index
    %128 = vector.load %arg2[%c0_76, %c0_77] : memref<8x1xi32, #tpu.memory_space<vmem>>, vector<8x1xi32>
    %c0_i32 = arith.constant 0 : i32
    %129 = vector.broadcast %c0_i32 : i32 to vector<8x1xi32>
    %130 = arith.cmpi eq, %128, %129 : vector<8x1xi32>
    %131 = arith.extui %130 : vector<8x1xi1> to vector<8x1xi32>
    %132 = arith.sitofp %131 : vector<8x1xi32> to vector<8x1xf32>
    %133 = vector.broadcast %132 : vector<8x1xf32> to vector<8x128xf32>
    %134 = arith.mulf %94, %133 : vector<8x128xf32>
    %c1_i32 = arith.constant 1 : i32
    %135 = vector.broadcast %c1_i32 : i32 to vector<8x1xi32>
    %136 = arith.cmpi eq, %128, %135 : vector<8x1xi32>
    %137 = arith.extui %136 : vector<8x1xi1> to vector<8x1xi32>
    %138 = arith.sitofp %137 : vector<8x1xi32> to vector<8x1xf32>
    %139 = vector.broadcast %138 : vector<8x1xf32> to vector<8x128xf32>
    %140 = arith.mulf %127, %139 : vector<8x128xf32>
    %141 = arith.addf %134, %140 : vector<8x128xf32>
    %c4 = arith.constant 4 : index
    %c0_78 = arith.constant 0 : index
    %c0_79 = arith.constant 0 : index
    %142 = vector.load %arg9[%c4, %c0_78, %c0_79] : memref<5x1x128xf32, #tpu.memory_space<vmem>>, vector<1x1x128xf32>
    %143 = vector.shape_cast %142 : vector<1x1x128xf32> to vector<1x128xf32>
    %144 = vector.broadcast %143 : vector<1x128xf32> to vector<8x128xf32>
    %145 = arith.mulf %141, %144 : vector<8x128xf32>
    %cst_80 = arith.constant dense<0.000000e+00> : vector<8xf32>
    %146 = vector.multi_reduction <add>, %145, %cst_80 [1] : vector<8x128xf32> to vector<8xf32>
    %147 = vector.shape_cast %146 : vector<8xf32> to vector<8x1xf32>
    %c0_81 = arith.constant 0 : index
    %c0_82 = arith.constant 0 : index
    %148 = vector.load %arg10[%c0_81, %c0_82] : memref<1x1xf32, #tpu.memory_space<vmem>>, vector<1x1xf32>
    %149 = vector.broadcast %148 : vector<1x1xf32> to vector<8x1xf32>
    %150 = arith.addf %147, %149 : vector<8x1xf32>
    %c0_83 = arith.constant 0 : index
    %c0_84 = arith.constant 0 : index
    %151 = vector.load %arg12[%c0_83, %c0_84] : memref<8x1xf32, #tpu.memory_space<vmem>>, vector<8x1xf32>
    tpu.vector_store %arg12[%c0_83, %c0_84], %150 {strides = array<i32>} : memref<8x1xf32, #tpu.memory_space<vmem>>, vector<8x1xf32>,
    return
  }
  func.func @transform_0(%arg0: i32) -> (i32, i32) {
    %c0_i32 = arith.constant 0 : i32
    %c0_i32_0 = arith.constant 0 : i32
    return %arg0, %c0_i32 : i32, i32
  }
  func.func @transform_1(%arg0: i32) -> (i32, i32) {
    %c0_i32 = arith.constant 0 : i32
    %c0_i32_0 = arith.constant 0 : i32
    return %arg0, %c0_i32 : i32, i32
  }
  func.func @transform_2(%arg0: i32) -> (i32, i32) {
    %c0_i32 = arith.constant 0 : i32
    %c0_i32_0 = arith.constant 0 : i32
    %c0_i32_1 = arith.constant 0 : i32
    return %c0_i32, %c0_i32_0 : i32, i32
  }
  func.func @transform_3(%arg0: i32) -> (i32, i32, i32) {
    %c0_i32 = arith.constant 0 : i32
    %c0_i32_0 = arith.constant 0 : i32
    %c0_i32_1 = arith.constant 0 : i32
    %c0_i32_2 = arith.constant 0 : i32
    return %c0_i32, %c0_i32_0, %c0_i32_1 : i32, i32, i32
  }
  func.func @transform_4(%arg0: i32) -> (i32, i32, i32) {
    %c0_i32 = arith.constant 0 : i32
    %c0_i32_0 = arith.constant 0 : i32
    %c0_i32_1 = arith.constant 0 : i32
    %c0_i32_2 = arith.constant 0 : i32
    return %c0_i32, %c0_i32_0, %c0_i32_1 : i32, i32, i32
  }
  func.func @transform_5(%arg0: i32) -> (i32, i32) {
    %c0_i32 = arith.constant 0 : i32
    %c0_i32_0 = arith.constant 0 : i32
    %c0_i32_1 = arith.constant 0 : i32
    return %c0_i32, %c0_i32_0 : i32, i32
  }
  func.func @transform_6(%arg0: i32) -> (i32, i32) {
    %c0_i32 = arith.constant 0 : i32
    %c0_i32_0 = arith.constant 0 : i32
    %c0_i32_1 = arith.constant 0 : i32
    return %c0_i32, %c0_i32_0 : i32, i32
  }
  func.func @transform_7(%arg0: i32) -> (i32, i32, i32) {
    %c0_i32 = arith.constant 0 : i32
    %c0_i32_0 = arith.constant 0 : i32
    %c0_i32_1 = arith.constant 0 : i32
    %c0_i32_2 = arith.constant 0 : i32
    return %c0_i32, %c0_i32_0, %c0_i32_1 : i32, i32, i32
  }
  func.func @transform_8(%arg0: i32) -> (i32, i32, i32) {
    %c0_i32 = arith.constant 0 : i32
    %c0_i32_0 = arith.constant 0 : i32
    %c0_i32_1 = arith.constant 0 : i32
    %c0_i32_2 = arith.constant 0 : i32
    return %c0_i32, %c0_i32_0, %c0_i32_1 : i32, i32, i32
  }
  func.func @transform_9(%arg0: i32) -> (i32, i32) {
    %c0_i32 = arith.constant 0 : i32
    %c0_i32_0 = arith.constant 0 : i32
    %c0_i32_1 = arith.constant 0 : i32
    return %c0_i32, %c0_i32_0 : i32, i32
  }
  func.func @transform_10(%arg0: i32) -> (i32, i32) {
    %c0_i32 = arith.constant 0 : i32
    %c0_i32_0 = arith.constant 0 : i32
    return %arg0, %c0_i32 : i32, i32
  }
  func.func @transform_11(%arg0: i32) -> (i32, i32) {
    %c0_i32 = arith.constant 0 : i32
    %c0_i32_0 = arith.constant 0 : i32
    return %arg0, %c0_i32 : i32, i32
  }
}

</mosaic_0001>

<bundles_post_ra>
// kernel: cfr_forward.1
= control target key start
LH: loop header
LB: loop body
LE: loop exit
PB: predicated region body
PF: predicated region fallthrough
CT: control target
= control target key end

     0   :  { %s1884_s0 = inlined_call_operand.vmem [shape: bf16[8,16], index: 0, kind: input, shape index: {}]   ;;  %s1885_s1 = inlined_call_operand.vmem [shape: s32[8,1], index: 1, kind: input, shape index: {}]   ;;  %s1886_s2 = inlined_call_operand.vmem [shape: bf16[16,128], index: 2, kind: input, shape index: {}]   ;;  %s1887_s3 = inlined_call_operand.vmem [shape: bf16[2,128,128], index: 3, kind: input, shape index: {}]   ;;  %s1888_s4 = inlined_call_operand.vmem [shape: f32[3,1,128], index: 4, kind: input, shape index: {}]   ;;  %s1889_s5 = inlined_call_operand.vmem [shape: bf16[128,256], index: 5, kind: input, shape index: {}]   ;;  %s1890_s6 = inlined_call_operand.vmem [shape: f32[1,256], index: 6, kind: input, shape index: {}]   ;;  %s1891_s7 = inlined_call_operand.vmem [shape: bf16[4,128,128], index: 7, kind: input, shape index: {}]   ;;  %s1892_s8 = inlined_call_operand.vmem [shape: f32[5,1,128], index: 8, kind: input, shape index: {}]   ;;  %s1893_s9 = inlined_call_operand.<no memory space> [shape: f32[1,1], index: 9, kind: input, shape index: {}]   ;;  %s1894_s10 = inlined_call_operand.hbm [shape: f32[8,128], index: 10, kind: output, shape index: {0}]   ;;  %s1895_s11 = inlined_call_operand.vmem [shape: f32[8,1], index: 11, kind: output, shape index: {1}]  }
   0x1   :  { %v17_v0 = vstv %s1893_s9 }
   0x2   :  { %18 = vst [vmem:[#allocation2] sm:$0x1] %v17_v0 }
   0x3   :  { %v1394_v1 = vld [vmem:[%s1886_s2] sm:$0xff]   ;;  %v1509_v2 = vmov 0.0   ;;  %vm1510_vm0 = vmmov 0   ;;  %vm57_vm1 = vcmask 130048   ;;  %v1396_v5 = vld [vmem:[%s1887_s3 + $0x8] sm:$0xff]  }
   0x4   :  { %1258 = vmatprep.subr.bf16.mxu0 %v1509_v2  ;;  %v41_v3 = vld [vmem:[%s1884_s0] sm:$0xf]  ;;  %1264 = vmatprep.subr.bf16.mxu1 %v1509_v2 }
   0x5   :  { %1259 = vmatpush3.bf16.msra.mxu0 %v1394_v1  ;;  %1260 = vmatprep.mubr.msk.bf16.mxu0 %vm1510_vm0, %v1509_v2  ;;  %v1395_v4 = vld [vmem:[%s1887_s3] sm:$0xff]  }
   0x6   :  { %1280 = vmatprep.mubr.msk.bf16.mxu1 %vm1510_vm0, %v1509_v2  ;;  %1284 = vmatprep.subr.bf16.mxu0 %v1509_v2 }
   0x7   :  { %1265 = vmatpush3.bf16.msra.mxu1 %v1395_v4 }
   0x8   :  { %1261 = vmatmul.mubr.msk.bf16.vlgmr.msra.gmra.mrb[0].mxu0 %vm57_vm1, %v41_v3  ;;  %1266 = vmatprep.subr.bf16.mxu1 %v1509_v2 }
   0x9   :  { %1300 = vmatprep.mubr.msk.bf16.mxu0 %vm1510_vm0, %v1509_v2 }
   0xb   :  { %1267 = vmatpush3.bf16.msra.mxu1 %v1396_v5 }
   0xc   :  { %1268 = vmatprep.subr.bf16.mxu1 %v1509_v2 }
   0xd   :  { %19 = vsyncpa [#allocation4], 0  ;;  %v1397_v6 = vld [vmem:[%s1887_s3 + $0x10] sm:$0xff]   ;;  %v1398_v7 = vld [vmem:[%s1887_s3 + $0x18] sm:$0xff]   ;;  %v1511_v60 = vmov 0   ;;  %s1512_s23 = smov [#allocation3]  }
   0xe   :  { %v1399_v8 = vld [vmem:[%s1887_s3 + $0x20] sm:$0xff]   ;;  %v1400_v9 = vld [vmem:[%s1887_s3 + $0x28] sm:$0xff]   ;;  %v1401_v10 = vld [vmem:[%s1887_s3 + $0x30] sm:$0xff]   ;;  %1388 = vset.pattern.permute.xlu0 %v1511_v60  ;;  %s1034_s2 = sshll.u32 %s1512_s23, 4  ;;  %s1035_s2 = int_to_ptr.vmem [resolvable:$true] %s1034_s2 }
   0xf   :  { %1269 = vmatpush3.bf16.msra.mxu1 %v1397_v6  ;;  %v1402_v11 = vld [vmem:[%s1887_s3 + $0x38] sm:$0xff]   ;;  %v1403_v12 = vld [vmem:[%s1887_s3 + $0x40] sm:$0xff]   ;;  %v1404_v13 = vld [vmem:[%s1887_s3 + $0x48] sm:$0xff]   ;;  %p1490_p1 = scmp.lt.s32.totalorder %s1035_s2, %s1035_s2 }
  0x10   :  { %1270 = vmatprep.subr.bf16.mxu1 %v1509_v2  ;;  %1285 = vmatpush3.bf16.msra.mxu0 %v1403_v12  ;;  %v1046_v14 = vld [vmem:[%s1888_s4] ss:$0 sm:$0xff]  ;;  %v1405_v26 = vld [vmem:[%s1887_s3 + $0x50] sm:$0xff]   ;;  %v1406_v27 = vld [vmem:[%s1887_s3 + $0x58] sm:$0xff]  }
  0x11   :  { %1286 = vmatprep.subr.bf16.mxu0 %v1509_v2  ;;  %v1407_v28 = vld [vmem:[%s1887_s3 + $0x60] sm:$0xff]   ;;  %v1408_v29 = vld [vmem:[%s1887_s3 + $0x68] sm:$0xff]   ;;  %v1409_v30 = vld [vmem:[%s1887_s3 + $0x70] sm:$0xff]  }
  0x12   :  { %v1410_v31 = vld [vmem:[%s1887_s3 + $0x78] sm:$0xff]   ;;  %v1411_v32 = vld [vmem:[%s1889_s5] ss:$8 sps:$4 sm:$0xff]   ;;  %v1413_v33 = vld [vmem:[%s1889_s5 + $0x4] ss:$8 sps:$4 sm:$0xff]  }
  0x13   :  { %1271 = vmatpush3.bf16.msra.mxu1 %v1398_v7  ;;  %v1416_v34 = vld [vmem:[%s1889_s5 + $0x14] ss:$8 sps:$4 sm:$0xff]   ;;  %v1414_v35 = vld [vmem:[%s1889_s5 + $0x10] ss:$8 sps:$4 sm:$0xff]   ;;  %v1419_v36 = vld [vmem:[%s1889_s5 + $0x24] ss:$8 sps:$4 sm:$0xff]  }
  0x14   :  { %1272 = vmatprep.subr.bf16.mxu1 %v1509_v2  ;;  %1287 = vmatpush3.bf16.msra.mxu0 %v1404_v13  ;;  %v1417_v37 = vld [vmem:[%s1889_s5 + $0x20] ss:$8 sps:$4 sm:$0xff]   ;;  %v1422_v50 = vld [vmem:[%s1889_s5 + $0x34] ss:$8 sps:$4 sm:$0xff]   ;;  %v1420_v51 = vld [vmem:[%s1889_s5 + $0x30] ss:$8 sps:$4 sm:$0xff]  }
  0x15   :  { %1288 = vmatprep.subr.bf16.mxu0 %v1509_v2  ;;  %v1051_v38 = vld [vmem:[%s1888_s4 + $0x1] ss:$0 sm:$0xff]  ;;  %v1425_v52 = vld [vmem:[%s1889_s5 + $0x44] ss:$8 sps:$4 sm:$0xff]   ;;  %v1428_v54 = vld [vmem:[%s1889_s5 + $0x54] ss:$8 sps:$4 sm:$0xff]  }
  0x16   :  { %v1423_v53 = vld [vmem:[%s1889_s5 + $0x40] ss:$8 sps:$4 sm:$0xff]   ;;  %v1426_v55 = vld [vmem:[%s1889_s5 + $0x50] ss:$8 sps:$4 sm:$0xff]   ;;  %v1431_v56 = vld [vmem:[%s1889_s5 + $0x64] ss:$8 sps:$4 sm:$0xff]  }
  0x17   :  { %1273 = vmatpush3.bf16.msra.mxu1 %v1399_v8  ;;  %v1429_v57 = vld [vmem:[%s1889_s5 + $0x60] ss:$8 sps:$4 sm:$0xff]   ;;  %v1434_v58 = vld [vmem:[%s1889_s5 + $0x74] ss:$8 sps:$4 sm:$0xff]   ;;  %v1432_v59 = vld [vmem:[%s1889_s5 + $0x70] ss:$8 sps:$4 sm:$0xff]  }
  0x18   :  { %1274 = vmatprep.subr.bf16.mxu1 %v1509_v2  ;;  %1289 = vmatpush3.bf16.msra.mxu0 %v1405_v26  ;;  %v1435_v61 = vld [vmem:[%s1891_s7] sm:$0xff]   ;;  %v1436_v62 = vld [vmem:[%s1891_s7 + $0x8] sm:$0xff]   ;;  %v1437_v63 = vld [vmem:[%s1891_s7 + $0x10] sm:$0xff]  }
  0x19   :  { %1290 = vmatprep.subr.bf16.mxu0 %v1509_v2  ;;  %v1078_v0 = vld [vmem:[%s1888_s4 + $0x2] ss:$0 sm:$0xff]  ;;  %v1438_v13 = vld [vmem:[%s1891_s7 + $0x18] sm:$0xff]  }
  0x1b   :  { %1275 = vmatpush3.bf16.msra.mxu1 %v1400_v9 }
  0x1c   :  { %1276 = vmatprep.subr.bf16.mxu1 %v1509_v2  ;;  %1291 = vmatpush3.bf16.msra.mxu0 %v1406_v27 }
  0x1d   :  { %1292 = vmatprep.subr.bf16.mxu0 %v1509_v2 }
  0x1f   :  { %1277 = vmatpush3.bf16.msra.mxu1 %v1401_v10 }
  0x20   :  { %1278 = vmatprep.subr.bf16.mxu1 %v1509_v2  ;;  %1293 = vmatpush3.bf16.msra.mxu0 %v1407_v28 }
  0x21   :  { %1294 = vmatprep.subr.bf16.mxu0 %v1509_v2 }
  0x23   :  { %1279 = vmatpush3.bf16.msra.mxu1 %v1402_v11 }
  0x24   :  { %1295 = vmatpush3.bf16.msra.mxu0 %v1408_v29  ;;  %456 = vmatprep.subr.bf16.mxu1 %v1413_v33 }
  0x25   :  { %1296 = vmatprep.subr.bf16.mxu0 %v1509_v2 }
  0x28   :  { %1297 = vmatpush3.bf16.msra.mxu0 %v1409_v30 }
  0x29   :  { %1298 = vmatprep.subr.bf16.mxu0 %v1509_v2 }
  0x2c   :  { %1299 = vmatpush3.bf16.msra.mxu0 %v1410_v31 }
  0x2d   :  { %1304 = vmatprep.subr.bf16.mxu0 %v1509_v2 }
  0xdb   :  { %v95_v15 = vpop.f32.mrb[0].mxu0 }
  0xdc   :  { %v96_v16 = vadd.f32 %v1046_v14, %v95_v15  ;;  %v1262_v17 = vpop.f32.mrb[1].mxu0  ;;  %v1439_v14 = vld [vmem:[%s1891_s7 + $0x20] sm:$0xff]   ;;  %v1440_v15 = vld [vmem:[%s1891_s7 + $0x28] sm:$0xff]  }
  0xdd   :  { %v98_v18 = vpop.f32.mrb[2].mxu0  ;;  %v1442_v17 = vld [vmem:[%s1891_s7 + $0x38] sm:$0xff]  }
  0xde   :  { %v102_v19 = vmin.f32 %v96_v16, 0.0  ;;  %v1263_v20 = vpop.f32.mrb[3].mxu0  ;;  %vm101_vm2 = vcmp.gt.f32.partialorder %v96_v16, 0.0  ;;  %v1451_v18 = vld [vmem:[%s1891_s7 + $0x40] sm:$0xff]  }
  0xdf   :  { %v1453_v20 = vld [vmem:[%s1891_s7 + $0x50] sm:$0xff]  }
  0xe0   :  { %v103_v21 = vmul.f32 1.442695, %v102_v19  ;;  %v1452_v19 = vld [vmem:[%s1891_s7 + $0x48] sm:$0xff]  }
  0xe2   :  { %1467 = vpow2.f32 %v103_v21  ;;  %v366_v21 = vlaneseq }
  0xec   :  { %v1468_v22 = vpop.eup %1467 }
  0xed   :  { %v1049_v23 = vadd.f32 -1.0, %v1468_v22  ;;  %v367_v22 = vshrl.u32 %v366_v21, 7 }
  0xef   :  { %v106_v24 = vsel %vm101_vm2, %v96_v16, %v1049_v23  ;;  %v1441_v16 = vld [vmem:[%s1891_s7 + $0x30] sm:$0xff]   ;;  %v368_v23 = vsub.s32 0, %v367_v22  ;;  %v372_v33 = vsub.s32 1, %v367_v22 }
  0xf0   :  { %v125_v25 = vpack.c.bf16 %v106_v24, %v106_v24  ;;  %v363_v24 = vld [vmem:[%s1890_s6] sm:$0x3]  ;;  %s1485_s6 = scalar_lea.vmem %s1035_s2, 128 }
  0xf1   :  { %p1486_p0 = scmp.ne.s32.totalorder %s1035_s2, %s1485_s6  ;;  %p1491_p2 = scmp.lt.s32.totalorder %s1485_s6, %s1485_s6 }
  0xf2   :  { %1281 = vmatmul.mubr.bf16.vlgmr.msra.gmra.mrb[0].mxu1 %v125_v25  ;;  %v369_v25 = vrot.slane %v363_v24, %v368_v23  ;;  %v1463_v23 = vld [vmem:[%s1891_s7 + $0xe0] sm:$0xff]  }
  0xf3   :  { %457 = vmatpush1.bf16.msra.mxu1 %v1411_v32  ;;  %488 = vmatprep.mubr.bf16.mxu1 %v1511_v60  ;;  %p1492_p3 = por %p1491_p2, %p1490_p1 }
  0xf4   :  { %458 = vmatprep.subr.bf16.mxu1 %v1416_v34 }
  0xf5   :  { %p1493_p4 = pnand %p1492_p3, %p1486_p0 }
  0xf7   :  { %459 = vmatpush1.bf16.msra.mxu1 %v1414_v35  ;;  %v373_v35 = vrot.slane %v363_v24, %v372_v33 }
  0xf8   :  { %460 = vmatprep.subr.bf16.mxu1 %v1419_v36 }
  0xfb   :  { %461 = vmatpush1.bf16.msra.mxu1 %v1417_v37 }
  0xfc   :  { %462 = vmatprep.subr.bf16.mxu1 %v1422_v50 }
  0xff   :  { %463 = vmatpush1.bf16.msra.mxu1 %v1420_v51  ;;  %v1450_v51 = vld [vmem:[%s1891_s7 + $0xb8] sm:$0xff]  }
 0x100   :  { %464 = vmatprep.subr.bf16.mxu1 %v1425_v52 }
 0x103   :  { %465 = vmatpush1.bf16.msra.mxu1 %v1423_v53 }
 0x104   :  { %466 = vmatprep.subr.bf16.mxu1 %v1428_v54  ;;  %v1454_v54 = vld [vmem:[%s1891_s7 + $0x58] sm:$0xff]  }
 0x107   :  { %467 = vmatpush1.bf16.msra.mxu1 %v1426_v55  ;;  %v1455_v55 = vld [vmem:[%s1891_s7 + $0x60] sm:$0xff]  }
 0x108   :  { %468 = vmatprep.subr.bf16.mxu1 %v1431_v56  ;;  %v1456_v56 = vld [vmem:[%s1891_s7 + $0x68] sm:$0xff]  }
 0x10b   :  { %469 = vmatpush1.bf16.msra.mxu1 %v1429_v57  ;;  %v1457_v57 = vld [vmem:[%s1891_s7 + $0x70] sm:$0xff]  }
 0x10c   :  { %470 = vmatprep.subr.bf16.mxu1 %v1434_v58  ;;  %v1458_v58 = vld [vmem:[%s1891_s7 + $0x78] sm:$0xff]  }
 0x10f   :  { %471 = vmatpush1.bf16.msra.mxu1 %v1432_v59  ;;  %v987_v59 = vld [vmem:[%s1885_s1] sm:$0xff] }
 0x110   :  { %1324 = vmatprep.subr.bf16.mxu1 %v1509_v2  ;;  %vm988_vm7 = vcmp.eq.s32.totalorder %v987_v59, 0  ;;  %vm997_vm8 = vcmp.eq.s32.totalorder %v987_v59, 1 }
 0x111   :  { %v1197_v60 = vsel %vm988_vm7, 1.0, %v1509_v2 }
 0x1c5   :  { %v214_v39 = vpop.f32.mrb[0].mxu1 }
 0x1c6   :  { %v215_v40 = vadd.f32 %v1051_v38, %v214_v39  ;;  %v1282_v41 = vpop.f32.mrb[1].mxu1  ;;  %v1443_v38 = vld [vmem:[%s1891_s7 + $0x80] sm:$0xff]  }
 0x1c7   :  { %v217_v42 = vpop.f32.mrb[2].mxu1  ;;  %v1444_v41 = vld [vmem:[%s1891_s7 + $0x88] sm:$0xff]  }
 0x1c8   :  { %v221_v43 = vmin.f32 %v215_v40, 0.0  ;;  %v1283_v44 = vpop.f32.mrb[3].mxu1  ;;  %vm220_vm3 = vcmp.gt.f32.partialorder %v215_v40, 0.0 }
 0x1ca   :  { %v222_v45 = vmul.f32 1.442695, %v221_v43  ;;  %v1445_v43 = vld [vmem:[%s1891_s7 + $0x90] sm:$0xff]  }
 0x1cc   :  { %1469 = vpow2.f32 %v222_v45  ;;  %v1446_v45 = vld [vmem:[%s1891_s7 + $0x98] sm:$0xff]  }
 0x1d6   :  { %v1470_v46 = vpop.eup %1469 }
 0x1d7   :  { %v1060_v47 = vadd.f32 -1.0, %v1470_v46  ;;  %v1447_v46 = vld [vmem:[%s1891_s7 + $0xa0] sm:$0xff]  }
 0x1d9   :  { %v225_v48 = vsel %vm220_vm3, %v215_v40, %v1060_v47  ;;  %v1448_v47 = vld [vmem:[%s1891_s7 + $0xa8] sm:$0xff]  }
 0x1da   :  { %v245_v49 = vpack.c.bf16 %v225_v48, %v225_v48 }
 0x1dc   :  { %1301 = vmatmul.mubr.bf16.vlgmr.msra.gmra.mrb[4].mxu0 %v245_v49  ;;  %v1449_v49 = vld [vmem:[%s1891_s7 + $0xb0] sm:$0xff]  }
 0x1dd   :  { %1320 = vmatprep.mubr.msk.bf16.mxu0 %vm1510_vm0, %v1509_v2  ;;  %1305 = vmatpush3.bf16.msra.mxu0 %v1435_v61  ;;  %v1198_v61 = vsel %vm997_vm8, 1.0, %v1509_v2 }
 0x1de   :  { %1306 = vmatprep.subr.bf16.mxu0 %v1509_v2 }
 0x1e1   :  { %1307 = vmatpush3.bf16.msra.mxu0 %v1436_v62  ;;  %v1389_v62 = vpack.i.bf16 %v1198_v61, %v1197_v60 }
 0x1e2   :  { %1308 = vmatprep.subr.bf16.mxu0 %v1509_v2 }
 0x1e3   :  { %1390 = vperm.xlu0 %1388, %v1389_v62  }
 0x1e5   :  { %1309 = vmatpush3.bf16.msra.mxu0 %v1437_v63  ;;  %v1106_v63 = vld [vmem:[%s1892_s8] ss:$0 sm:$0xff] }
 0x1e6   :  { %1310 = vmatprep.subr.bf16.mxu0 %v1509_v2 }
 0x1e9   :  { %1311 = vmatpush3.bf16.msra.mxu0 %v1438_v13  ;;  %v1460_v13 = vld [vmem:[%s1891_s7 + $0xc8] sm:$0xff]  }
 0x1ea   :  { %1312 = vmatprep.subr.bf16.mxu0 %v1509_v2 }
 0x1ed   :  { %1313 = vmatpush3.bf16.msra.mxu0 %v1439_v14  ;;  %v1461_v14 = vld [vmem:[%s1891_s7 + $0xd0] sm:$0xff]  }
 0x1ee   :  { %1314 = vmatprep.subr.bf16.mxu0 %v1509_v2 }
 0x1f1   :  { %1315 = vmatpush3.bf16.msra.mxu0 %v1440_v15  ;;  %v1160_v15 = vld [vmem:[%s1892_s8 + $0x2] ss:$0 sm:$0xff] }
 0x1f2   :  { %1316 = vmatprep.subr.bf16.mxu0 %v1509_v2 }
 0x1f5   :  { %1317 = vmatpush3.bf16.msra.mxu0 %v1441_v16 }
 0x1f6   :  { %1318 = vmatprep.subr.bf16.mxu0 %v1509_v2 }
 0x1f9   :  { %1319 = vmatpush3.bf16.msra.mxu0 %v1442_v17  ;;  %v1462_v17 = vld [vmem:[%s1891_s7 + $0xd8] sm:$0xff]  }
 0x1fa   :  { %1344 = vmatprep.subr.bf16.mxu0 %v1509_v2 }
 0x2af   :  { %v334_v1 = vpop.f32.mrb[4].mxu0 }
 0x2b0   :  { %v335_v3 = vadd.f32 %v1078_v0, %v334_v1  ;;  %v1302_v4 = vpop.f32.mrb[5].mxu0 }
 0x2b1   :  { %v337_v5 = vpop.f32.mrb[6].mxu0 }
 0x2b2   :  { %v341_v6 = vmin.f32 %v335_v3, 0.0  ;;  %v1303_v7 = vpop.f32.mrb[7].mxu0  ;;  %vm340_vm4 = vcmp.gt.f32.partialorder %v335_v3, 0.0 }
 0x2b4   :  { %v342_v8 = vmul.f32 1.442695, %v341_v6 }
 0x2b6   :  { %1471 = vpow2.f32 %v342_v8 }
 0x2c0   :  { %v1472_v9 = vpop.eup %1471 }
 0x2c1   :  { %v1087_v10 = vadd.f32 -1.0, %v1472_v9 }
 0x2c3   :  { %v345_v11 = vsel %vm340_vm4, %v335_v3, %v1087_v10 }
 0x2c4   :  { %v364_v12 = vpack.c.bf16 %v345_v11, %v345_v11  ;;  %346 = vst [vmem:[#allocation3] sm:$0xff] %v345_v11  ;;  %v1459_v11 = vld [vmem:[%s1891_s7 + $0xc0] sm:$0xff]  }
 0x2c6   :  { %489 = vmatmul.mubr.bf16.vlgmr.msra.gmra.mrb[4].mxu1 %v364_v12 }
 0x2c7   :  { %1340 = vmatprep.mubr.msk.bf16.mxu1 %vm1510_vm0, %v1509_v2  ;;  %1325 = vmatpush3.bf16.msra.mxu1 %v1451_v18 }
 0x2c8   :  { %1326 = vmatprep.subr.bf16.mxu1 %v1509_v2 }
 0x2cb   :  { %1327 = vmatpush3.bf16.msra.mxu1 %v1452_v19 }
 0x2cc   :  { %1328 = vmatprep.subr.bf16.mxu1 %v1509_v2 }
 0x2cf   :  { %1329 = vmatpush3.bf16.msra.mxu1 %v1453_v20 }
 0x2d0   :  { %1330 = vmatprep.subr.bf16.mxu1 %v1509_v2 }
 0x2d3   :  { %1331 = vmatpush3.bf16.msra.mxu1 %v1454_v54 }
 0x2d4   :  { %1332 = vmatprep.subr.bf16.mxu1 %v1509_v2 }
 0x2d7   :  { %1333 = vmatpush3.bf16.msra.mxu1 %v1455_v55 }
 0x2d8   :  { %1334 = vmatprep.subr.bf16.mxu1 %v1509_v2 }
 0x2db   :  { %1335 = vmatpush3.bf16.msra.mxu1 %v1456_v56 }
 0x2dc   :  { %1336 = vmatprep.subr.bf16.mxu1 %v1509_v2 }
 0x2df   :  { %1337 = vmatpush3.bf16.msra.mxu1 %v1457_v57 }
 0x2e0   :  { %1338 = vmatprep.subr.bf16.mxu1 %v1509_v2 }
 0x2e3   :  { %1339 = vmatpush3.bf16.msra.mxu1 %v1458_v58  ;;  %v1200_v58 = vld [vmem:[%s1892_s8 + $0x4] ss:$0 sm:$0xff] }
 0x2e4   :  { %1364 = vmatprep.subr.bf16.mxu1 %v1509_v2 }
 0x399   :  { %v490_v26 = vpop.f32.mrb[4].mxu1 }
 0x39a   :  { %v491_v27 = vadd.f32 %v490_v26, %v369_v25  ;;  %v492_v28 = vpop.f32.mrb[5].mxu1  ;;  %v1464_v25 = vld [vmem:[%s1891_s7 + $0xe8] sm:$0xff]   ;;  %v1465_v26 = vld [vmem:[%s1891_s7 + $0xf0] sm:$0xff]  }
 0x39b   :  { %v494_v29 = vpop.f32.mrb[6].mxu1  ;;  %v493_v40 = vadd.f32 %v492_v28, %v373_v35 }
 0x39c   :  { %v499_v30 = vmin.f32 %v491_v27, 0.0  ;;  %v495_v31 = vpop.f32.mrb[7].mxu1  ;;  %vm497_vm5 = vcmp.gt.f32.partialorder %v491_v27, 0.0 }
 0x39d   :  { %v500_v42 = vmin.f32 %v493_v40, 0.0  ;;  %vm498_vm6 = vcmp.gt.f32.partialorder %v493_v40, 0.0 }
 0x39e   :  { %v501_v32 = vmul.f32 1.442695, %v499_v30 }
 0x39f   :  { %v503_v44 = vmul.f32 1.442695, %v500_v42 }
 0x3a0   :  { %1473 = vpow2.f32 %v501_v32 }
 0x3a1   :  { %1475 = vpow2.f32 %v503_v44 }
 0x3aa   :  { %v1474_v34 = vpop.eup %1473 }
 0x3ab   :  { %v1104_v36 = vadd.f32 -1.0, %v1474_v34  ;;  %v1476_v48 = vpop.eup %1475 }
 0x3ac   :  { %v1105_v50 = vadd.f32 -1.0, %v1476_v48 }
 0x3ad   :  { %v507_v37 = vsel %vm497_vm5, %v491_v27, %v1104_v36  ;;  %v1466_v27 = vld [vmem:[%s1891_s7 + $0xf8] sm:$0xff]   ;;  %v1133_v36 = vld [vmem:[%s1892_s8 + $0x1] ss:$0 sm:$0xff] }
 0x3ae   :  { %v526_v39 = vpack.c.bf16 %v507_v37, %v507_v37  ;;  %v508_v52 = vsel %vm498_vm6, %v493_v40, %v1105_v50 }
 0x3af   :  { %v766_v53 = vpack.c.bf16 %v508_v52, %v508_v52 }
 0x3b0   :  { %1321 = vmatmul.mubr.bf16.vlgmr.msra.gmra.mrb[8].mxu0 %v526_v39 }
 0x3b1   :  { %1345 = vmatpush3.bf16.msra.mxu0 %v1443_v38  ;;  %1360 = vmatprep.mubr.msk.bf16.mxu0 %vm1510_vm0, %v1509_v2 }
 0x3b2   :  { %1346 = vmatprep.subr.bf16.mxu0 %v1509_v2 }
 0x3b5   :  { %1347 = vmatpush3.bf16.msra.mxu0 %v1444_v41 }
 0x3b6   :  { %1348 = vmatprep.subr.bf16.mxu0 %v1509_v2 }
 0x3b9   :  { %1349 = vmatpush3.bf16.msra.mxu0 %v1445_v43 }
 0x3ba   :  { %1350 = vmatprep.subr.bf16.mxu0 %v1509_v2 }
 0x3bd   :  { %1351 = vmatpush3.bf16.msra.mxu0 %v1446_v45 }
 0x3be   :  { %1352 = vmatprep.subr.bf16.mxu0 %v1509_v2 }
 0x3c1   :  { %1353 = vmatpush3.bf16.msra.mxu0 %v1447_v46 }
 0x3c2   :  { %1354 = vmatprep.subr.bf16.mxu0 %v1509_v2 }
 0x3c5   :  { %1355 = vmatpush3.bf16.msra.mxu0 %v1448_v47 }
 0x3c6   :  { %1356 = vmatprep.subr.bf16.mxu0 %v1509_v2 }
 0x3c9   :  { %1357 = vmatpush3.bf16.msra.mxu0 %v1449_v49  ;;  %v1391_v49 = vpop.permute.xlu0 %1390 }
 0x3ca   :  { %1358 = vmatprep.subr.bf16.mxu0 %v1509_v2  ;;  %v1392_v52 = vunpack.i.l.bf16 %v1391_v49 }
 0x3cd   :  { %1359 = vmatpush3.bf16.msra.mxu0 %v1450_v51  ;;  %v1393_v51 = vunpack.i.h.bf16 %v1391_v49 }
 0x3d0   :  { %1361 = vmatmul.mubr.bf16.vlgmr.msra.gmra.mrb[12].mxu0 %v766_v53 }
 0x483   :  { %v615_v0 = vpop.f32.mrb[8].mxu0 }
 0x484   :  { %v616_v1 = vadd.f32 %v1106_v63, %v615_v0  ;;  %v1322_v3 = vpop.f32.mrb[9].mxu0 }
 0x485   :  { %v618_v4 = vpop.f32.mrb[10].mxu0 }
 0x486   :  { %v622_v5 = vmin.f32 %v616_v1, 0.0  ;;  %v1323_v6 = vpop.f32.mrb[11].mxu0  ;;  %vm621_vm9 = vcmp.gt.f32.partialorder %v616_v1, 0.0 }
 0x488   :  { %v623_v7 = vmul.f32 1.442695, %v622_v5 }
 0x48a   :  { %1477 = vpow2.f32 %v623_v7 }
 0x494   :  { %v1478_v8 = vpop.eup %1477 }
 0x495   :  { %v1115_v9 = vadd.f32 -1.0, %v1478_v8 }
 0x497   :  { %v626_v10 = vsel %vm621_vm9, %v616_v1, %v1115_v9 }
 0x498   :  { %v646_v12 = vpack.c.bf16 %v626_v10, %v626_v10 }
 0x49a   :  { %1341 = vmatmul.mubr.bf16.vlgmr.msra.gmra.mrb[8].mxu1 %v646_v12 }
 0x49b   :  { %1365 = vmatpush3.bf16.msra.mxu1 %v1459_v11  ;;  %1380 = vmatprep.mubr.msk.bf16.mxu1 %vm1510_vm0, %v1509_v2 }
 0x49c   :  { %1366 = vmatprep.subr.bf16.mxu1 %v1509_v2 }
 0x49f   :  { %1367 = vmatpush3.bf16.msra.mxu1 %v1460_v13 }
 0x4a0   :  { %1368 = vmatprep.subr.bf16.mxu1 %v1509_v2 }
 0x4a3   :  { %v855_v16 = vpop.f32.mrb[12].mxu0  ;;  %1369 = vmatpush3.bf16.msra.mxu1 %v1461_v14 }
 0x4a4   :  { %v856_v18 = vadd.f32 %v1160_v15, %v855_v16  ;;  %v1362_v19 = vpop.f32.mrb[13].mxu0  ;;  %1370 = vmatprep.subr.bf16.mxu1 %v1509_v2 }
 0x4a5   :  { %v858_v20 = vpop.f32.mrb[14].mxu0 }
 0x4a6   :  { %v862_v21 = vmin.f32 %v856_v18, 0.0  ;;  %v1363_v22 = vpop.f32.mrb[15].mxu0  ;;  %vm861_vm10 = vcmp.gt.f32.partialorder %v856_v18, 0.0 }
 0x4a7   :  { %1371 = vmatpush3.bf16.msra.mxu1 %v1462_v17 }
 0x4a8   :  { %v863_v24 = vmul.f32 1.442695, %v862_v21  ;;  %1372 = vmatprep.subr.bf16.mxu1 %v1509_v2 }
 0x4aa   :  { %1479 = vpow2.f32 %v863_v24 }
 0x4ab   :  { %1373 = vmatpush3.bf16.msra.mxu1 %v1463_v23 }
 0x4ac   :  { %1374 = vmatprep.subr.bf16.mxu1 %v1509_v2 }
 0x4af   :  { %1375 = vmatpush3.bf16.msra.mxu1 %v1464_v25 }
 0x4b0   :  { %1376 = vmatprep.subr.bf16.mxu1 %v1509_v2 }
 0x4b3   :  { %1377 = vmatpush3.bf16.msra.mxu1 %v1465_v26 }
 0x4b4   :  { %v1480_v28 = vpop.eup %1479  ;;  %1378 = vmatprep.subr.bf16.mxu1 %v1509_v2  ;;  %v1187_v2 = vld [vmem:[%s1892_s8 + $0x3] ss:$0 sm:$0xff] }
 0x4b5   :  { %v1169_v29 = vadd.f32 -1.0, %v1480_v28 }
 0x4b7   :  { %v866_v30 = vsel %vm861_vm10, %v856_v18, %v1169_v29  ;;  %1379 = vmatpush3.bf16.msra.mxu1 %v1466_v27 }
 0x4b8   :  { %v886_v31 = vpack.c.bf16 %v866_v30, %v866_v30 }
 0x4ba   :  { %1381 = vmatmul.mubr.bf16.vlgmr.msra.gmra.mrb[12].mxu1 %v886_v31 }
 0x56d   :  { %v735_v32 = vpop.f32.mrb[8].mxu1 }
 0x56e   :  { %v1342_v33 = vpop.f32.mrb[9].mxu1  ;;  %v736_v37 = vadd.f32 %v1133_v36, %v735_v32 }
 0x56f   :  { %v738_v34 = vpop.f32.mrb[10].mxu1 }
 0x570   :  { %v1343_v35 = vpop.f32.mrb[11].mxu1  ;;  %v742_v38 = vmin.f32 %v736_v37, 0.0  ;;  %vm741_vm11 = vcmp.gt.f32.partialorder %v736_v37, 0.0 }
 0x572   :  { %v743_v39 = vmul.f32 1.442695, %v742_v38 }
 0x574   :  { %1481 = vpow2.f32 %v743_v39 }
 0x57e   :  { %v1482_v47 = vpop.eup %1481 }
 0x57f   :  { %v1142_v48 = vadd.f32 -1.0, %v1482_v47 }
 0x581   :  { %v746_v53 = vsel %vm741_vm11, %v736_v37, %v1142_v48 }
 0x582   :  { %v996_v56 = vmul.f32 %v1392_v52, %v746_v53 }
 0x58d   :  { %v975_v40 = vpop.f32.mrb[12].mxu1 }
 0x58e   :  { %v976_v41 = vadd.f32 %v1187_v2, %v975_v40  ;;  %v1382_v42 = vpop.f32.mrb[13].mxu1 }
 0x58f   :  { %v978_v43 = vpop.f32.mrb[14].mxu1 }
 0x590   :  { %v982_v44 = vmin.f32 %v976_v41, 0.0  ;;  %v1383_v45 = vpop.f32.mrb[15].mxu1  ;;  %vm981_vm12 = vcmp.gt.f32.partialorder %v976_v41, 0.0 }
 0x592   :  { %v983_v46 = vmul.f32 1.442695, %v982_v44 }
 0x594   :  { %1483 = vpow2.f32 %v983_v46 }
 0x59e   :  { %v1484_v50 = vpop.eup %1483 }
 0x59f   :  { %v1196_v54 = vadd.f32 -1.0, %v1484_v50 }
 0x5a1   :  { %v986_v55 = vsel %vm981_vm12, %v976_v41, %v1196_v54 }
 0x5a2   :  { %v1005_v57 = vmul.f32 %v1393_v51, %v986_v55 }
 0x5a4   :  { %v1006_v59 = vadd.f32 %v1005_v57, %v996_v56 }
 0x5a6   :  { %v1015_v60 = vmul.f32 %v1200_v58, %v1006_v59 }
 0x5a8   :  { %1016 = vadd.xlane.f32.xlu0 %v1015_v60 }
 0x5a9   :  { %1496 = shalt.err (!%p1493_p4)
}
 0x5aa   :  { %s1497_s5 = scalar_lea.hbm %s1894_s10, 128 }
 0x5ab   :  { %p1498_p5 = scmp.ne.s32.totalorder %s1894_s10, %s1497_s5  ;;  %p1501_p6 = scmp.lt.u32.totalorder %s1497_s5, %s1894_s10 }
 0x5ad   :  { %p1503_p7 = pnand %p1501_p6, %p1498_p5 }
 0x5af   :  { %1506 = shalt.err (!%p1503_p7)
}
 0x5b0   :  { %1037 = dma.vmem_to_hbm [thread:$0]  %s1035_s2, 128, %s1894_s10, [#allocation4]   ;;  %v1201_v61 = vld [vmem:[#allocation2] ss:$0 sm:$0xff]  ;;  %vm1026_vm13 = vcmask 7168  }
 0x635   :  { %v1017_v62 = vpop.xlane.xlu0 %1016 }
 0x636   :  { %v1025_v63 = vadd.f32 %v1201_v61, %v1017_v62 }
 0x638   :  { %1027 = vst.msk [vmem:[%s1895_s11] sm:$0xff] %vm1026_vm13, %v1025_v63 }
 0x639   :  { %1507 = dma.done.wait [#allocation4], 128  }
 0x63a   :  { %1508 = vsyncadd [#allocation4], 4294967168 }
 0x63b   :  { %1045 = vsyncpa [#allocation4], 1 }

</bundles_post_ra>
